<compile_context>
chip_gen: v7x
topology: tpu7x:2x2x1
jax: 0.10.0
libtpu: 0.0.40
codegen_flags: <defaults>
</compile_context>

<pallas_src>
import jax
import jax.numpy as jnp
from jax.experimental import pallas as pl
from jax.experimental.pallas import tpu as pltpu

# ------------------------- model constants -------------------------

Q_THRES = 2
CS_THRES = 2
PTS_TOTAL_THRES = 2
PS_THRES = 2
IMG_FEAT_DIM = 2537
HIDDEN = 100
SEG = Q_THRES * HIDDEN                       # 200 (q / cs / pts segments all = 200)
CONCAT_DIM = (Q_THRES + CS_THRES + PTS_TOTAL_THRES + PS_THRES) * HIDDEN  # 800

# Batch rows per grid step.  img tile is (TILE_B, PS=2->8 sublanes, 2537->2560
# lanes) f32 = TILE_B * 80 KiB; double-buffered + the other activations this
# stays ~11 MiB at 64 rows, under v5e's 16 MiB scoped-VMEM default (v6e/v7x
# have 32 MiB; raise vmem_limit_bytes if you want bigger tiles there).
MAX_TILE_B = 64


# ------------------------- fused Pallas kernel -------------------------

def _fused_kernel(img_ref, q_ref, cs_ref, pts_ref, w1f_ref, w2s_ref, o_ref):
    """Whole LinearModel forward for one batch tile; pure VPU + lane reduces.

    img_ref : (TB, PS, IMG_FEAT_DIM)  f32  raw image features (natural shape)
    q_ref   : (TB, SEG)               f32
    cs_ref  : (TB, 4, SEG)            f32
    pts_ref : (TB, SEG)               f32
    w1f_ref : (1, PS, IMG_FEAT_DIM)   f32  W1 folded through w2's img segment
    w2s_ref : (4, SEG)                f32  rows: w2_q, w2_cs, w2_pts, [b2_fold,0..]
    o_ref   : (TB, 4)                 f32
    """
    seg = q_ref.shape[-1]

    w2_q = w2s_ref[0:1, :]                           # (1, SEG)
    w2_cs = w2s_ref[1:2, :].reshape(1, 1, seg)       # (1, 1, SEG)
    w2_pts = w2s_ref[2:3, :]                         # (1, SEG)
    b2 = w2s_ref[3:4, 0:1]                           # (1, 1)  folded bias

    # img contribution:  sum_{p,k} x[b,p,k] * W1_fold[p,k]
    img_w = img_ref[...] * w1f_ref[...]                                   # (TB,PS,D)
    img_term = jnp.sum(jnp.sum(img_w, axis=-1), axis=-1, keepdims=True)   # (TB,1)

    q_term = jnp.sum(q_ref[...] * w2_q, axis=-1, keepdims=True)           # (TB,1)
    pts_term = jnp.sum(pts_ref[...] * w2_pts, axis=-1, keepdims=True)     # (TB,1)
    cs_term = jnp.sum(cs_ref[...] * w2_cs, axis=-1)                       # (TB,4)

    # out[b,i] = shared(b) + cs_term(b,i)
    o_ref[...] = (q_term + img_term + pts_term + b2) + cs_term            # (TB,4)


# ------------------------- parameters -------------------------

def init_params(key):
    """Logical (PyTorch-equivalent) parameters, stored (in, out), f32."""
    k1, k2, k3, k4 = jax.random.split(key, 4)
    w1 = jax.random.normal(k1, (IMG_FEAT_DIM, HIDDEN), jnp.float32) * 0.02
    b1 = jax.random.normal(k2, (HIDDEN,), jnp.float32) * 0.02
    w2 = jax.random.normal(k3, (CONCAT_DIM, 1), jnp.float32) * 0.02
    b2 = jax.random.normal(k4, (1,), jnp.float32) * 0.02
    return dict(w1=w1, b1=b1, w2=w2, b2=b2)


def pack_params(params):
    """One-time: fold W1/b1 through the output weight; consolidate small vecs."""
    w1 = params["w1"]                    # (2537, 100)
    b1 = params["b1"]                    # (100,)
    w2 = params["w2"][:, 0]              # (800,)
    b2 = params["b2"][0]                 # scalar

    o0 = Q_THRES * HIDDEN                # 200  end of q segment
    o1 = o0 + PS_THRES * HIDDEN          # 400  end of img segment
    o2 = o1 + CS_THRES * HIDDEN          # 600  end of cs segment

    w2_q = w2[:o0]                                    # (200,)
    w2_img = w2[o0:o1].reshape(PS_THRES, HIDDEN)      # (2, 100)
    w2_cs = w2[o1:o2]                                 # (200,)
    w2_pts = w2[o2:]                                  # (200,)

    # Exact fold (img_proj only feeds the 800->1 Linear, it is never emitted):
    #   sum_{p,h} (x_p @ W1 + b1)[h] * w2_img[p,h]
    #     = sum_{p,k} x_p[k] * (w2_img @ W1^T)[p,k]  +  sum_p w2_img[p] . b1
    w1_fold = (w2_img @ w1.T)[None]                   # (1, PS, 2537) f32, ~20 KiB
    b2_fold = b2 + jnp.sum(w2_img @ b1)               # scalar

    assert CS_THRES * HIDDEN == SEG and PTS_TOTAL_THRES * HIDDEN == SEG
    small = jnp.zeros((4, SEG), jnp.float32)
    small = small.at[0].set(w2_q).at[1].set(w2_cs).at[2].set(w2_pts)
    small = small.at[3, 0].set(b2_fold)               # bias packed into row 3

    return dict(w1_fold=w1_fold, w2_small=small)


# ------------------------- forward pass -------------------------

@jax.jit
def linear_model_forward(packed, img_feats, q_vec, cs_vec, pts_vec):
    """
    img_feats: (B, PS_THRES, 2537)    q_vec:   (B, Q_THRES, 100)
    cs_vec:    (B, 4, CS_THRES, 100)  pts_vec: (B, PTS_TOTAL_THRES, 100)
    returns:   (B, 4)
    """
    B = q_vec.shape[0]

    # Contiguous (free) reshapes only -- no pad, no cast, no extra HBM pass.
    q_flat = q_vec.reshape(B, Q_THRES * HIDDEN)
    cs_flat = cs_vec.reshape(B, 4, CS_THRES * HIDDEN)
    pts_flat = pts_vec.reshape(B, PTS_TOTAL_THRES * HIDDEN)

    # tile_b is either the full batch (small B) or a multiple of 8 (large B),
    # so the (8,128)-divisibility rule on blocked dims is always satisfied.
    tile_b = B if B <= MAX_TILE_B else MAX_TILE_B
    grid = (pl.cdiv(B, tile_b),)

    out = pl.pallas_call(
        _fused_kernel,
        out_shape=jax.ShapeDtypeStruct((B, 4), jnp.float32),
        grid_spec=pltpu.PrefetchScalarGridSpec(
            num_scalar_prefetch=0,
            grid=grid,
            in_specs=[
                # batch-tiled activations (double-buffered by the pipeline)
                pl.BlockSpec((tile_b, PS_THRES, IMG_FEAT_DIM), lambda b: (b, 0, 0)),
                pl.BlockSpec((tile_b, Q_THRES * HIDDEN), lambda b: (b, 0)),
                pl.BlockSpec((tile_b, 4, CS_THRES * HIDDEN), lambda b: (b, 0, 0)),
                pl.BlockSpec((tile_b, PTS_TOTAL_THRES * HIDDEN), lambda b: (b, 0)),
                # weights: constant block index -> VMEM-resident across steps
                pl.BlockSpec((1, PS_THRES, IMG_FEAT_DIM), lambda b: (0, 0, 0)),
                pl.BlockSpec((4, SEG), lambda b: (0, 0)),
            ],
            out_specs=pl.BlockSpec((tile_b, 4), lambda b: (b, 0)),
        ),
        compiler_params=pltpu.CompilerParams(
            dimension_semantics=("parallel",)),   # shard batch tiles across TCs
    )(img_feats, q_flat, cs_flat, pts_flat,
      packed["w1_fold"], packed["w2_small"])
    return out


# ------------------------- demo / correctness check -------------------------

if __name__ == "__main__":
    key = jax.random.PRNGKey(0)
    kp, k1, k2, k3, k4 = jax.random.split(key, 5)

    B = 2
    params = init_params(kp)
    packed = pack_params(params)

    img_feats = jax.random.normal(k1, (B, PS_THRES, IMG_FEAT_DIM), jnp.float32)
    q_vec = jax.random.normal(k2, (B, Q_THRES, HIDDEN), jnp.float32)
    cs_vec = jax.random.normal(k3, (B, 4, CS_THRES, HIDDEN), jnp.float32)
    pts_vec = jax.random.normal(k4, (B, PTS_TOTAL_THRES, HIDDEN), jnp.float32)

    out = linear_model_forward(packed, img_feats, q_vec, cs_vec, pts_vec)
    out = jax.block_until_ready(out)
    assert out.shape == (B, 4), out.shape
    assert out.dtype == jnp.float32

    # Reference: plain-JAX f32 math following the PyTorch module exactly.
    img_proj_ref = (
        img_feats.reshape(B * PS_THRES, IMG_FEAT_DIM) @ params["w1"] + params["b1"]
    ).reshape(B, PS_THRES, HIDDEN)
    rows_ref = []
    for i in range(4):
        cat = jnp.concatenate(
            [q_vec, img_proj_ref, cs_vec[:, i, :, :], pts_vec], axis=1)
        rows_ref.append(cat.reshape(B, -1))
    concat_ref = jnp.stack(rows_ref, axis=1)
    out_ref = (concat_ref @ params["w2"] + params["b2"]).squeeze(-1)

    # Everything is f32 now (no bf16 MXU stage) -> tight tolerance.
    err = jnp.max(jnp.abs(out - out_ref))
    assert jnp.allclose(out, out_ref, atol=1e-3, rtol=1e-3), err

    print("KERNEL_OK")
</pallas_src>

<mosaic_0001>
module attributes {stable_mosaic.version = 11 : i64} {
  func.func @_fused_kernel(%arg0: i32, %arg1: memref<2x2x2537xf32, #tpu.memory_space<vmem>>, %arg2: memref<2x200xf32, #tpu.memory_space<vmem>>, %arg3: memref<2x4x200xf32, #tpu.memory_space<vmem>>, %arg4: memref<2x200xf32, #tpu.memory_space<vmem>>, %arg5: memref<1x2x2537xf32, #tpu.memory_space<vmem>>, %arg6: memref<4x200xf32, #tpu.memory_space<vmem>>, %arg7: memref<2x4xf32, #tpu.memory_space<vmem>>) attributes {dimension_semantics = [#tpu.dimension_semantics<parallel>], iteration_bounds = array<i64: 1>, scalar_prefetch = 0 : i64, scratch_operands = 0 : i64, tpu.core_type = #tpu.core_type<tc>, window_params = [{transform_indices = @transform_0, window_bounds = array<i64: 2, 2, 2537>}, {transform_indices = @transform_1, window_bounds = array<i64: 2, 200>}, {transform_indices = @transform_2, window_bounds = array<i64: 2, 4, 200>}, {transform_indices = @transform_3, window_bounds = array<i64: 2, 200>}, {pipeline_mode = #tpu.pipeline_mode<synchronous>, transform_indices = @transform_4, window_bounds = array<i64: 1, 2, 2537>}, {pipeline_mode = #tpu.pipeline_mode<synchronous>, transform_indices = @transform_5, window_bounds = array<i64: 4, 200>}, {transform_indices = @transform_6, window_bounds = array<i64: 2, 4>}]} {
    %c0 = arith.constant 0 : index
    %c0_0 = arith.constant 0 : index
    %0 = vector.load %arg6[%c0, %c0_0] : memref<4x200xf32, #tpu.memory_space<vmem>>, vector<1x200xf32>
    %c1 = arith.constant 1 : index
    %c0_1 = arith.constant 0 : index
    %1 = vector.load %arg6[%c1, %c0_1] : memref<4x200xf32, #tpu.memory_space<vmem>>, vector<1x200xf32>
    %2 = vector.shape_cast %1 : vector<1x200xf32> to vector<1x1x200xf32>
    %c2 = arith.constant 2 : index
    %c0_2 = arith.constant 0 : index
    %3 = vector.load %arg6[%c2, %c0_2] : memref<4x200xf32, #tpu.memory_space<vmem>>, vector<1x200xf32>
    %c3 = arith.constant 3 : index
    %c0_3 = arith.constant 0 : index
    %4 = vector.load %arg6[%c3, %c0_3] : memref<4x200xf32, #tpu.memory_space<vmem>>, vector<1x1xf32>
    %c0_4 = arith.constant 0 : index
    %c0_5 = arith.constant 0 : index
    %c0_6 = arith.constant 0 : index
    %5 = vector.load %arg1[%c0_4, %c0_5, %c0_6] : memref<2x2x2537xf32, #tpu.memory_space<vmem>>, vector<2x2x2537xf32>
    %c0_7 = arith.constant 0 : index
    %c0_8 = arith.constant 0 : index
    %c0_9 = arith.constant 0 : index
    %6 = vector.load %arg5[%c0_7, %c0_8, %c0_9] : memref<1x2x2537xf32, #tpu.memory_space<vmem>>, vector<1x2x2537xf32>
    %7 = vector.broadcast %6 : vector<1x2x2537xf32> to vector<2x2x2537xf32>
    %8 = arith.mulf %5, %7 : vector<2x2x2537xf32>
    %cst = arith.constant dense<0.000000e+00> : vector<2x2xf32>
    %9 = vector.multi_reduction <add>, %8, %cst [2] : vector<2x2x2537xf32> to vector<2x2xf32>
    %cst_10 = arith.constant dense<0.000000e+00> : vector<2xf32>
    %10 = vector.multi_reduction <add>, %9, %cst_10 [1] : vector<2x2xf32> to vector<2xf32>
    %11 = vector.shape_cast %10 : vector<2xf32> to vector<2x1xf32>
    %c0_11 = arith.constant 0 : index
    %c0_12 = arith.constant 0 : index
    %12 = vector.load %arg2[%c0_11, %c0_12] : memref<2x200xf32, #tpu.memory_space<vmem>>, vector<2x200xf32>
    %13 = vector.broadcast %0 : vector<1x200xf32> to vector<2x200xf32>
    %14 = arith.mulf %12, %13 : vector<2x200xf32>
    %cst_13 = arith.constant dense<0.000000e+00> : vector<2xf32>
    %15 = vector.multi_reduction <add>, %14, %cst_13 [1] : vector<2x200xf32> to vector<2xf32>
    %16 = vector.shape_cast %15 : vector<2xf32> to vector<2x1xf32>
    %c0_14 = arith.constant 0 : index
    %c0_15 = arith.constant 0 : index
    %17 = vector.load %arg4[%c0_14, %c0_15] : memref<2x200xf32, #tpu.memory_space<vmem>>, vector<2x200xf32>
    %18 = vector.broadcast %3 : vector<1x200xf32> to vector<2x200xf32>
    %19 = arith.mulf %17, %18 : vector<2x200xf32>
    %cst_16 = arith.constant dense<0.000000e+00> : vector<2xf32>
    %20 = vector.multi_reduction <add>, %19, %cst_16 [1] : vector<2x200xf32> to vector<2xf32>
    %21 = vector.shape_cast %20 : vector<2xf32> to vector<2x1xf32>
    %c0_17 = arith.constant 0 : index
    %c0_18 = arith.constant 0 : index
    %c0_19 = arith.constant 0 : index
    %22 = vector.load %arg3[%c0_17, %c0_18, %c0_19] : memref<2x4x200xf32, #tpu.memory_space<vmem>>, vector<2x4x200xf32>
    %23 = vector.broadcast %2 : vector<1x1x200xf32> to vector<2x4x200xf32>
    %24 = arith.mulf %22, %23 : vector<2x4x200xf32>
    %cst_20 = arith.constant dense<0.000000e+00> : vector<2x4xf32>
    %25 = vector.multi_reduction <add>, %24, %cst_20 [2] : vector<2x4x200xf32> to vector<2x4xf32>
    %26 = arith.addf %16, %11 : vector<2x1xf32>
    %27 = arith.addf %26, %21 : vector<2x1xf32>
    %28 = vector.broadcast %4 : vector<1x1xf32> to vector<2x1xf32>
    %29 = arith.addf %27, %28 : vector<2x1xf32>
    %30 = vector.broadcast %29 : vector<2x1xf32> to vector<2x4xf32>
    %31 = arith.addf %30, %25 : vector<2x4xf32>
    %c0_21 = arith.constant 0 : index
    %c0_22 = arith.constant 0 : index
    %32 = vector.load %arg7[%c0_21, %c0_22] : memref<2x4xf32, #tpu.memory_space<vmem>>, vector<2x4xf32>
    tpu.vector_store %arg7[%c0_21, %c0_22], %31 {strides = array<i32>} : memref<2x4xf32, #tpu.memory_space<vmem>>, vector<2x4xf32>,
    return
  }
  func.func @transform_0(%arg0: i32) -> (i32, i32, i32) {
    %c0_i32 = arith.constant 0 : i32
    %c0_i32_0 = arith.constant 0 : i32
    %c0_i32_1 = arith.constant 0 : i32
    return %arg0, %c0_i32, %c0_i32_0 : i32, i32, i32
  }
  func.func @transform_1(%arg0: i32) -> (i32, i32) {
    %c0_i32 = arith.constant 0 : i32
    %c0_i32_0 = arith.constant 0 : i32
    return %arg0, %c0_i32 : i32, i32
  }
  func.func @transform_2(%arg0: i32) -> (i32, i32, i32) {
    %c0_i32 = arith.constant 0 : i32
    %c0_i32_0 = arith.constant 0 : i32
    %c0_i32_1 = arith.constant 0 : i32
    return %arg0, %c0_i32, %c0_i32_0 : i32, i32, i32
  }
  func.func @transform_3(%arg0: i32) -> (i32, i32) {
    %c0_i32 = arith.constant 0 : i32
    %c0_i32_0 = arith.constant 0 : i32
    return %arg0, %c0_i32 : i32, i32
  }
  func.func @transform_4(%arg0: i32) -> (i32, i32, i32) {
    %c0_i32 = arith.constant 0 : i32
    %c0_i32_0 = arith.constant 0 : i32
    %c0_i32_1 = arith.constant 0 : i32
    %c0_i32_2 = arith.constant 0 : i32
    return %c0_i32, %c0_i32_0, %c0_i32_1 : i32, i32, i32
  }
  func.func @transform_5(%arg0: i32) -> (i32, i32) {
    %c0_i32 = arith.constant 0 : i32
    %c0_i32_0 = arith.constant 0 : i32
    %c0_i32_1 = arith.constant 0 : i32
    return %c0_i32, %c0_i32_0 : i32, i32
  }
  func.func @transform_6(%arg0: i32) -> (i32, i32) {
    %c0_i32 = arith.constant 0 : i32
    %c0_i32_0 = arith.constant 0 : i32
    return %arg0, %c0_i32 : i32, i32
  }
}

</mosaic_0001>

<bundles_post_ra>
// kernel: linear_model_forward.1
= control target key start
LH: loop header
LB: loop body
LE: loop exit
PB: predicated region body
PF: predicated region fallthrough
CT: control target
= control target key end

     0   :  { %11 = vsyncpa [#allocation3], 0  ;;  %s826_s0 = inlined_call_operand.hbm [shape: f32[2,2,2537], index: 0, kind: input, shape index: {}]   ;;  %s827_s1 = inlined_call_operand.vmem [shape: f32[2,200], index: 1, kind: input, shape index: {}]   ;;  %s828_s2 = inlined_call_operand.vmem [shape: f32[2,4,200], index: 2, kind: input, shape index: {}]   ;;  %s829_s3 = inlined_call_operand.vmem [shape: f32[2,200], index: 3, kind: input, shape index: {}]   ;;  %s830_s4 = inlined_call_operand.vmem [shape: f32[1,2,2537], index: 4, kind: input, shape index: {}]   ;;  %s831_s5 = inlined_call_operand.hbm [shape: f32[4,200], index: 5, kind: input, shape index: {}]   ;;  %s832_s6 = inlined_call_operand.hbm [shape: f32[2,4], index: 6, kind: output, shape index: {}]  }
   0x1   :  { %12 = vsyncpa [#allocation6], 0 }
   0x2   :  { %13 = vsyncpa [#allocation4], 0  ;;  %s635_s21 = smov [#allocation2]   ;;  %s563_s25 = scalar_lea.hbm %s826_s0, 1280 }
   0x3   :  { %s19_s22 = sshll.u32 %s635_s21, 4  ;;  %p564_p0 = scmp.ne.s32.totalorder %s826_s0, %s563_s25  ;;  %s20_s22 = int_to_ptr.vmem [resolvable:$true] %s19_s22 }
   0x4   :  { %p567_p1 = scmp.lt.u32.totalorder %s563_s25, %s826_s0 }
   0x6   :  { %p569_p2 = pnand %p567_p1, %p564_p0 }
   0x8   :  { %572 = shalt.err (!%p569_p2)
}
   0x9   :  { %s573_s30 = scalar_lea.vmem %s20_s22, 1280  ;;  %p578_p4 = scmp.lt.s32.totalorder %s20_s22, %s20_s22 }
   0xa   :  { %p574_p3 = scmp.ne.s32.totalorder %s20_s22, %s573_s30  ;;  %p579_p5 = scmp.lt.s32.totalorder %s573_s30, %s573_s30 }
   0xc   :  { %p580_p6 = por %p579_p5, %p578_p4 }
   0xe   :  { %p581_p7 = pnand %p580_p6, %p574_p3 }
  0x10   :  { %584 = shalt.err (!%p581_p7)
}
  0x11   :  { %s636_s7 = smov 640   ;;  %s637_s8 = smov 40  }
  0x12   :  { %25 = dma.hbm_to_vmem [thread:$0]  %s826_s0, 1280, %s20_s22, [#allocation3], %s636_s7, %s636_s7, %s637_s8  }
  0x13   :  { %s638_s11 = smov [#allocation5]   ;;  %s585_s15 = scalar_lea.hbm %s831_s5, 128 }
  0x14   :  { %s40_s12 = sshll.u32 %s638_s11, 4  ;;  %p586_p8 = scmp.ne.s32.totalorder %s831_s5, %s585_s15  ;;  %s41_s12 = int_to_ptr.vmem [resolvable:$true] %s40_s12 }
  0x15   :  { %p589_p9 = scmp.lt.u32.totalorder %s585_s15, %s831_s5 }
  0x17   :  { %p591_p10 = pnand %p589_p9, %p586_p8 }
  0x19   :  { %594 = shalt.err (!%p591_p10)
}
  0x1a   :  { %s595_s20 = scalar_lea.vmem %s41_s12, 128  ;;  %p600_p12 = scmp.lt.s32.totalorder %s41_s12, %s41_s12 }
  0x1b   :  { %p596_p11 = scmp.ne.s32.totalorder %s41_s12, %s595_s20  ;;  %p601_p13 = scmp.lt.s32.totalorder %s595_s20, %s595_s20 }
  0x1d   :  { %p602_p0 = por %p601_p13, %p600_p12 }
  0x1f   :  { %p603_p1 = pnand %p602_p0, %p596_p11 }
  0x21   :  { %606 = shalt.err (!%p603_p1)
}
  0x22   :  { %43 = dma.hbm_to_vmem [thread:$0]  %s831_s5, 128, %s41_s12, [#allocation6]  }
  0x23   :  { %629 = dma.done.wait [#allocation3], 1280  }
  0x24   :  { %630 = vsyncadd [#allocation3], 4294966016 }
  0x25   :  { %631 = dma.done.wait [#allocation6], 128  }
  0x26   :  { %632 = vsyncadd [#allocation6], 4294967168  ;;  %v95_v0 = vlaneseq  ;;  %v639_v1 = vmov 1983009808   ;;  %v56_v5 = vld [vmem:[#allocation2] sm:$0xff]  ;;  %v57_v7 = vld [vmem:[#allocation2 + $0x8] sm:$0xff] }
  0x27   :  { %v93_v2 = vunpack.c.l.s4 %v639_v1  ;;  %v66_v8 = vld [vmem:[%s830_s4] sm:$0xff]  ;;  %v67_v9 = vld [vmem:[%s830_s4 + $0x8] sm:$0xff]  ;;  %vm301_vm0 = vcmask 1041408   ;;  %v58_v19 = vld [vmem:[#allocation2 + $0x10] sm:$0xff]  ;;  %vm339_vm1 = vcmask 852992   ;;  %vm436_vm2 = vcmask 582656  }
  0x28   :  { %v702_v4 = vshrl.u32 %v95_v0, 7  ;;  %v71_v10 = vmul.f32 %v66_v8, %v56_v5  ;;  %v72_v11 = vmul.f32 %v67_v9, %v57_v7  ;;  %v68_v20 = vld [vmem:[%s830_s4 + $0x10] sm:$0xff]  ;;  %v61_v25 = vld [vmem:[#allocation2 + $0x28] sm:$0xff]  ;;  %v59_v35 = vld [vmem:[#allocation2 + $0x18] sm:$0xff]  ;;  %vm498_vm3 = vcmask 1043456  }
  0x29   :  { %v94_v3 = vunpack.c.0.s8 %v93_v2  ;;  %v73_v26 = vmul.f32 %v68_v20, %v58_v19  ;;  %v76_v32 = vmul.f32 %v66_v8, %v61_v25  ;;  %v62_v34 = vld [vmem:[#allocation2 + $0x30] sm:$0xff]  ;;  %v728_v36 = vld [vmem:[%s830_s4 + $0x18] sm:$0xff]  ;;  %v60_v63 = vld [vmem:[#allocation2 + $0x20] sm:$0xff]  ;;  %vm500_vm4 = vcmask 584704  }
  0x2a   :  { %v91_v12 = vcombine.high %v71_v10, %v71_v10  ;;  %v108_v17 = vcombine.high %v72_v11, %v72_v11  ;;  %v77_v44 = vmul.f32 %v67_v9, %v62_v34  ;;  %v74_v46 = vmul.f32 %v728_v36, %v59_v35  ;;  %v63_v61 = vld [vmem:[#allocation2 + $0x38] sm:$0xff]  ;;  %v745_v1 = vld [vmem:[%s830_s4 + $0x20] sm:$0xff] }
  0x2b   :  { %v705_v6 = vsub.s32 %v94_v3, %v702_v4  ;;  %v125_v38 = vcombine.high %v73_v26, %v73_v26  ;;  %v176_v42 = vcombine.high %v76_v32, %v76_v32  ;;  %vm397_vm5 = vcmask 1041409  }
  0x2c   :  { %v193_v56 = vcombine.high %v77_v44, %v77_v44  ;;  %v142_v58 = vcombine.high %v74_v46, %v74_v46  ;;  %vm400_vm6 = vcmask 9216   ;;  %vm535_vm7 = vcmask 25600  }
  0x2d   :  { %v98_v13 = vrot.slane %v71_v10, %v705_v6  ;;  %v105_v14 = vrot.slane %v91_v12, %v705_v6  ;;  %v115_v18 = vrot.slane %v72_v11, %v705_v6  ;;  %v122_v27 = vrot.slane %v108_v17, %v705_v6 }
  0x2e   :  { %v132_v39 = vrot.slane %v73_v26, %v705_v6  ;;  %v183_v45 = vrot.slane %v76_v32, %v705_v6  ;;  %v190_v48 = vrot.slane %v176_v42, %v705_v6  ;;  %v139_v49 = vrot.slane %v125_v38, %v705_v6 }
  0x2f   :  { %v106_v15 = vcombine.high %v98_v13, %v98_v13  ;;  %v107_v16 = vcombine.high %v105_v14, %v105_v14  ;;  %v302_v21 = vsel %vm301_vm0, %v98_v13, 0.0  ;;  %v305_v23 = vsel %vm301_vm0, %v105_v14, 0.0 }
  0x30   :  { %v123_v28 = vcombine.high %v115_v18, %v115_v18  ;;  %v309_v31 = vsel %vm301_vm0, %v115_v18, 0.0  ;;  %v124_v37 = vcombine.high %v122_v27, %v122_v27  ;;  %v313_v43 = vsel %vm301_vm0, %v122_v27, 0.0 }
  0x31   :  { %v303_v22 = vsel %vm301_vm0, %v106_v15, 0.0  ;;  %v307_v29 = vsel %vm301_vm0, %v107_v16, 0.0  ;;  %v140_v50 = vcombine.high %v132_v39, %v132_v39  ;;  %v191_v52 = vcombine.high %v183_v45, %v183_v45 }
  0x32   :  { %v304_v24 = vadd.f32 %v303_v22, %v302_v21  ;;  %v311_v40 = vsel %vm301_vm0, %v123_v28, 0.0  ;;  %v315_v51 = vsel %vm301_vm0, %v124_v37, 0.0  ;;  %v317_v54 = vsel %vm301_vm0, %v132_v39, 0.0 }
  0x33   :  { %v192_v55 = vcombine.high %v190_v48, %v190_v48  ;;  %v200_v57 = vrot.slane %v77_v44, %v705_v6  ;;  %v149_v59 = vrot.slane %v74_v46, %v705_v6  ;;  %v344_v62 = vsel %vm301_vm0, %v183_v45, 0.0 }
  0x34   :  { %v306_v30 = vadd.f32 %v305_v23, %v304_v24  ;;  %v141_v2 = vcombine.high %v139_v49, %v139_v49  ;;  %v319_v3 = vsel %vm301_vm0, %v140_v50, 0.0  ;;  %v345_v5 = vsel %vm301_vm0, %v191_v52, 0.0 }
  0x35   :  { %v347_v7 = vsel %vm301_vm0, %v190_v48, 0.0  ;;  %v321_v9 = vsel %vm301_vm0, %v139_v49, 0.0  ;;  %v346_v10 = vadd.f32 %v345_v5, %v344_v62  ;;  %v78_v11 = vmul.f32 %v68_v20, %v63_v61 }
  0x36   :  { %v308_v33 = vadd.f32 %v307_v29, %v306_v30  ;;  %v207_v12 = vrot.slane %v193_v56, %v705_v6  ;;  %v208_v13 = vcombine.high %v200_v57, %v200_v57  ;;  %v349_v14 = vsel %vm301_vm0, %v192_v55, 0.0 }
  0x37   :  { %v75_v15 = vmul.f32 %v745_v1, %v60_v63  ;;  %v348_v17 = vadd.f32 %v347_v7, %v346_v10  ;;  %v156_v18 = vrot.slane %v142_v58, %v705_v6  ;;  %v157_v19 = vcombine.high %v149_v59, %v149_v59  ;;  %v65_v58 = vld [vmem:[#allocation2 + $0x48] sm:$0xff] }
  0x38   :  { %v310_v41 = vadd.f32 %v309_v31, %v308_v33  ;;  %v323_v21 = vsel %vm301_vm0, %v141_v2, 0.0  ;;  %v351_v22 = vsel %vm301_vm0, %v200_v57, 0.0  ;;  %v325_v24 = vsel %vm301_vm0, %v149_v59, 0.0  ;;  %v64_v31 = vld [vmem:[#allocation2 + $0x40] sm:$0xff] }
  0x39   :  { %v350_v20 = vadd.f32 %v349_v14, %v348_v17  ;;  %v209_v25 = vcombine.high %v207_v12, %v207_v12  ;;  %v210_v26 = vcombine.high %v78_v11, %v78_v11  ;;  %v217_v27 = vrot.slane %v78_v11, %v705_v6 }
  0x3a   :  { %v312_v47 = vadd.f32 %v311_v40, %v310_v41  ;;  %v353_v28 = vsel %vm301_vm0, %v208_v13, 0.0  ;;  %v159_v29 = vcombine.high %v75_v15, %v75_v15  ;;  %v158_v33 = vcombine.high %v156_v18, %v156_v18 }
  0x3b   :  { %v352_v32 = vadd.f32 %v351_v22, %v350_v20  ;;  %v166_v34 = vrot.slane %v75_v15, %v705_v6  ;;  %v327_v35 = vsel %vm301_vm0, %v157_v19, 0.0  ;;  %v355_v37 = vsel %vm301_vm0, %v207_v12, 0.0 }
  0x3c   :  { %v314_v53 = vadd.f32 %v313_v43, %v312_v47  ;;  %v329_v39 = vsel %vm301_vm0, %v156_v18, 0.0  ;;  %v79_v41 = vmul.f32 %v728_v36, %v64_v31  ;;  %v224_v42 = vrot.slane %v210_v26, %v705_v6 }
  0x3d   :  { %v354_v40 = vadd.f32 %v353_v28, %v352_v32  ;;  %v225_v43 = vcombine.high %v217_v27, %v217_v27  ;;  %v357_v44 = vsel %vm301_vm0, %v209_v25, 0.0  ;;  %v173_v47 = vrot.slane %v159_v29, %v705_v6 }
  0x3e   :  { %v316_v60 = vadd.f32 %v315_v51, %v314_v53  ;;  %v174_v48 = vcombine.high %v166_v34, %v166_v34  ;;  %v331_v49 = vsel %vm301_vm0, %v158_v33, 0.0  ;;  %v359_v50 = vsel %vm301_vm0, %v217_v27, 0.0 }
  0x3f   :  { %v356_v46 = vadd.f32 %v355_v37, %v354_v40  ;;  %v333_v52 = vsel %vm301_vm0, %v166_v34, 0.0  ;;  %v227_v36 = vcombine.high %v79_v41, %v79_v41  ;;  %v234_v55 = vrot.slane %v79_v41, %v705_v6  ;;  %v50_v40 = vld [vmem:[#allocation5] ss:$4 sm:$0x3] }
  0x40   :  { %v318_v8 = vadd.f32 %v317_v54, %v316_v60  ;;  %v226_v54 = vcombine.high %v224_v42, %v224_v42  ;;  %v361_v56 = vsel %vm301_vm0, %v225_v43, 0.0  ;;  %v175_v60 = vcombine.high %v173_v47, %v173_v47  ;;  %v54_v43 = vld [vmem:[#allocation5 + $0x2] ss:$4 sm:$0x3] }
  0x41   :  { %v358_v53 = vadd.f32 %v357_v44, %v356_v46  ;;  %v335_v61 = vsel %vm301_vm0, %v174_v48, 0.0  ;;  %v363_v62 = vsel %vm301_vm0, %v224_v42, 0.0  ;;  %v337_v2 = vsel %vm301_vm0, %v173_v47, 0.0 }
  0x42   :  { %v320_v16 = vadd.f32 %v319_v3, %v318_v8  ;;  %v80_v5 = vmul.f32 %v745_v1, %v65_v58  ;;  %v241_v7 = vrot.slane %v227_v36, %v705_v6  ;;  %v242_v8 = vcombine.high %v234_v55, %v234_v55 }
  0x43   :  { %v360_v59 = vadd.f32 %v359_v50, %v358_v53  ;;  %v340_v12 = vsel %vm339_vm1, %v175_v60, 0.0  ;;  %v367_v13 = vsel %vm301_vm0, %v234_v55, 0.0 }
  0x44   :  { %v322_v23 = vadd.f32 %v321_v9, %v320_v16  ;;  %v365_v9 = vsel %vm301_vm0, %v226_v54, 0.0  ;;  %v243_v16 = vcombine.high %v241_v7, %v241_v7  ;;  %v244_v17 = vcombine.high %v80_v5, %v80_v5 }
  0x45   :  { %v362_v3 = vadd.f32 %v361_v56, %v360_v59  ;;  %v251_v18 = vrot.slane %v80_v5, %v705_v6  ;;  %v369_v19 = vsel %vm301_vm0, %v242_v8, 0.0  ;;  %v371_v22 = vsel %vm301_vm0, %v241_v7, 0.0  ;;  %v478_v5 = vld [vmem:[%s828_s2 + $0x8] sm:$0xff] }
  0x46   :  { %v324_v30 = vadd.f32 %v323_v21, %v322_v23  ;;  %v373_v25 = vsel %vm301_vm0, %v243_v16, 0.0 }
  0x47   :  { %v364_v11 = vadd.f32 %v363_v62, %v362_v3  ;;  %v259_v20 = vcombine.high %v251_v18, %v251_v18  ;;  %v375_v27 = vsel %vm301_vm0, %v251_v18, 0.0  ;;  %v388_v18 = vand.u32 127, %v95_v0 }
  0x48   :  { %v326_v38 = vadd.f32 %v325_v24, %v324_v30  ;;  %v258_v24 = vrot.slane %v244_v17, %v705_v6 }
  0x49   :  { %v366_v15 = vadd.f32 %v365_v9, %v364_v11  ;;  %v377_v30 = vsel %vm301_vm0, %v259_v20, 0.0 }
  0x4a   :  { %v328_v45 = vadd.f32 %v327_v35, %v326_v38  ;;  %v260_v29 = vcombine.high %v258_v24, %v258_v24  ;;  %v379_v32 = vsel %vm301_vm0, %v258_v24, 0.0  ;;  %v408_v38 = vsub.s32 0, %v702_v4 }
  0x4b   :  { %v368_v21 = vadd.f32 %v367_v13, %v366_v15 }
  0x4c   :  { %v330_v51 = vadd.f32 %v329_v39, %v328_v45  ;;  %v381_v34 = vsel %vm339_vm1, %v260_v29, 0.0  ;;  %v412_v39 = vsub.s32 1, %v702_v4  ;;  %v409_v41 = vrot.slane %v50_v40, %v408_v38  ;;  %v553_v29 = vld [vmem:[#allocation5 + $0x3] ss:$0 sm:$0xff] }
  0x4d   :  { %v370_v23 = vadd.f32 %v369_v19, %v368_v21  ;;  %v446_v45 = vrot.slane %v54_v43, %v408_v38 }
  0x4e   :  { %v332_v57 = vadd.f32 %v331_v49, %v330_v51  ;;  %v413_v42 = vrot.slane %v50_v40, %v412_v39  ;;  %v450_v46 = vrot.slane %v54_v43, %v412_v39  ;;  %v404_v49 = vld [vmem:[%s827_s1] sm:$0xf] }
  0x4f   :  { %v372_v26 = vadd.f32 %v371_v22, %v370_v23 }
  0x50   :  { %v334_v63 = vadd.f32 %v333_v52, %v332_v57  ;;  %v414_v44 = vcombine.low %v409_v41, %v413_v42  ;;  %v451_v48 = vcombine.low %v446_v45, %v450_v46  ;;  %v441_v52 = vld [vmem:[%s829_s3] sm:$0xf] }
  0x51   :  { %v374_v28 = vadd.f32 %v373_v25, %v372_v26  ;;  %v640_v25 = vmov 0  }
  0x52   :  { %v336_v10 = vadd.f32 %v335_v61, %v334_v63  ;;  %v421_v47 = vrot.slane %v414_v44, %v705_v6  ;;  %v458_v51 = vrot.slane %v451_v48, %v705_v6  ;;  %v52_v63 = vld [vmem:[#allocation5 + $0x1] ss:$4 sm:$0x3]  ;;  %561 = vset.pattern.permute.xlu1 %v640_v25  ;;  %562 = vset.pattern.permute.xlu0 %v640_v25 }
  0x53   :  { %v376_v31 = vadd.f32 %v375_v27, %v374_v28  ;;  %v487_v3 = vrot.slane %v52_v63, %v412_v39 }
  0x54   :  { %v338_v14 = vadd.f32 %v337_v2, %v336_v10  ;;  %v423_v50 = vmul.f32 %v421_v47, %v404_v49  ;;  %v460_v54 = vmul.f32 %v458_v51, %v441_v52  ;;  %v483_v2 = vrot.slane %v52_v63, %v408_v38 }
  0x55   :  { %v378_v33 = vadd.f32 %v377_v30, %v376_v31 }
  0x56   :  { %v341_v1 = vadd.f32 %v340_v12, %v338_v14  ;;  %v431_v53 = vrot.slane %v423_v50, %v705_v6  ;;  %v468_v55 = vrot.slane %v460_v54, %v705_v6  ;;  %v477_v6 = vld [vmem:[%s828_s2] sm:$0xff]  ;;  %v488_v7 = vcombine.low %v483_v2, %v487_v3  ;;  %s641_s2 = smov [#allocation7]  }
  0x57   :  { %v380_v35 = vadd.f32 %v379_v32, %v378_v33  ;;  %s543_s12 = sshll.u32 %s641_s2, 4  ;;  %s544_s12 = int_to_ptr.vmem [resolvable:$true] %s543_s12 }
  0x58   :  { %342 = vadd.xlane.f32.xlu0 %v341_v1  ;;  %v432_v36 = vcombine.high %v431_v53, %v431_v53  ;;  %v435_v56 = vsel %vm301_vm0, %v431_v53, 0.0  ;;  %v469_v58 = vcombine.high %v468_v55, %v468_v55  ;;  %v472_v60 = vsel %vm301_vm0, %v468_v55, 0.0  ;;  %s607_s13 = scalar_lea.vmem %s544_s12, 32  ;;  %p612_p3 = scmp.lt.s32.totalorder %s544_s12, %s544_s12 }
  0x59   :  { %v382_v37 = vadd.f32 %v381_v34, %v380_v35  ;;  %v491_v8 = vmul.f32 %v488_v7, %v478_v5  ;;  %v490_v9 = vmul.f32 %v488_v7, %v477_v6  ;;  %v391_v1 = vsub.s32 %v388_v18, %v702_v4  ;;  %p608_p2 = scmp.ne.s32.totalorder %s544_s12, %s607_s13  ;;  %p613_p4 = scmp.lt.s32.totalorder %s607_s13, %s607_s13 }
  0x5a   :  { %v437_v57 = vsel %vm436_vm2, %v432_v36, 0.0  ;;  %v473_v61 = vsel %vm436_vm2, %v469_v58, 0.0 }
  0x5b   :  { %v438_v59 = vadd.f32 %v437_v57, %v435_v56  ;;  %v474_v62 = vadd.f32 %v473_v61, %v472_v60  ;;  %v495_v10 = vcombine.high %v491_v8, %v491_v8  ;;  %v505_v11 = vsel %vm498_vm3, %v491_v8, 0.0  ;;  %p614_p5 = por %p613_p4, %p612_p3 }
  0x5c   :  { %383 = vadd.xlane.f32.xlu0 %v382_v37  ;;  %v494_v12 = vcombine.high %v490_v9, %v490_v9  ;;  %v499_v13 = vsel %vm498_vm3, %v490_v9, 0.0 }
  0x5d   :  { %v506_v14 = vsel %vm500_vm4, %v495_v10, 0.0  ;;  %p615_p6 = pnand %p614_p5, %p608_p2 }
  0x5e   :  { %v501_v15 = vsel %vm500_vm4, %v494_v12, 0.0  ;;  %v507_v16 = vadd.f32 %v506_v14, %v505_v11 }
  0x5f   :  { %v502_v17 = vadd.f32 %v501_v15, %v499_v13 }
  0x60   :  { %475 = vadd.xlane.f32.xlu0 %v474_v62 }
  0x64   :  { %508 = vadd.xlane.f32.xlu0 %v507_v16 }
  0xe5   :  { %v343_v19 = vpop.xlane.xlu0 %342 }
  0xe6   :  { %v392_v22 = vrot.slane %v343_v19, %v391_v1 }
  0xe9   :  { %v384_v21 = vpop.xlane.xlu0 %383 }
  0xea   :  { %v396_v23 = vrot.slane %v384_v21, %v391_v1 }
  0xec   :  { %v398_v24 = vsel %vm397_vm5, %v396_v23, %v392_v22 }
  0xed   :  { %v401_v20 = vsel %vm400_vm6, %v398_v24, 0.0  ;;  %v476_v0 = vpop.xlane.xlu0 %475 }
  0xee   :  { %402 = vadd.xlane.f32.xlu1 %v401_v20 }
  0xf1   :  { %v509_v31 = vpop.xlane.xlu0 %508 }
  0xf2   :  { %439 = vadd.xlane.f32.xlu1 %v438_v59  ;;  %v531_v33 = vrot.slane %v509_v31, %v391_v1 }
  0xf6   :  { %503 = vadd.xlane.f32.xlu1 %v502_v17 }
 0x17b   :  { %v403_v26 = vpop.xlane.xlu1 %402 }
 0x17f   :  { %v440_v27 = vpop.xlane.xlu1 %439 }
 0x180   :  { %v510_v28 = vadd.f32 %v440_v27, %v403_v26 }
 0x182   :  { %v511_v4 = vadd.f32 %v510_v28, %v476_v0 }
 0x183   :  { %v504_v32 = vpop.xlane.xlu1 %503 }
 0x184   :  { %v516_v30 = vadd.f32 %v553_v29, %v511_v4  ;;  %v527_v34 = vrot.slane %v504_v32, %v391_v1 }
 0x186   :  { %519 = vperm.xlu1 %561, %v516_v30   ;;  %v532_v35 = vsel %vm397_vm5, %v531_v33, %v527_v34 }
 0x205   :  { %v520_v37 = vpop.permute.xlu1 %519 }
 0x206   :  { %v534_v38 = vadd.f32 %v532_v35, %v520_v37 }
 0x208   :  { %536 = vst.msk [vmem:[#allocation7] sm:$0x3] %vm535_vm7, %v534_v38 }
 0x209   :  { %618 = shalt.err (!%p615_p6)
}
 0x20a   :  { %s619_s16 = scalar_lea.hbm %s832_s6, 32 }
 0x20b   :  { %p620_p7 = scmp.ne.s32.totalorder %s832_s6, %s619_s16  ;;  %p623_p8 = scmp.lt.u32.totalorder %s619_s16, %s832_s6 }
 0x20d   :  { %p625_p9 = pnand %p623_p8, %p620_p7 }
 0x20f   :  { %628 = shalt.err (!%p625_p9)
}
 0x210   :  { %546 = dma.vmem_to_hbm [thread:$0]  %s544_s12, 32, %s832_s6, [#allocation4]  }
 0x211   :  { %633 = dma.done.wait [#allocation4], 32  }
 0x212   :  { %634 = vsyncadd [#allocation4], 4294967264 }
 0x213   :  { %550 = vsyncpa [#allocation3], 1 }
 0x214   :  { %551 = vsyncpa [#allocation6], 1 }
 0x215   :  { %552 = vsyncpa [#allocation4], 1 }

</bundles_post_ra>
